<compile_context>
chip_gen: v7x
topology: tpu7x:2x2x1
jax: 0.10.0
libtpu: 0.0.40
codegen_flags: <defaults>
</compile_context>

<pallas_src>
import jax
import jax.numpy as jnp
from jax.experimental import pallas as pl
from jax.experimental.pallas import tpu as pltpu


# ---------------------------------------------------------------------------
# Kernels
# ---------------------------------------------------------------------------
# INVARIANT for the multi-k kernels: the reduction axis MUST be the LAST grid
# axis and marked "arbitrary" so the (i, j) output / accumulator block stays
# resident in VMEM across k.  Do not reorder the grid or mark k "parallel".

def _conv1d_kernel_single_step(x_ref, w_ref, b_ref, o_ref):
    """Whole reduction in one k step: no accumulator round-trip at all."""
    acc = jnp.dot(x_ref[...], w_ref[...], preferred_element_type=jnp.float32)
    o_ref[...] = (acc + b_ref[...]).astype(o_ref.dtype)


def _conv1d_kernel_f32_out(x_ref, w_ref, b_ref, o_ref):
    """f32 output, multi-step k: accumulate directly into the resident block."""
    k = pl.program_id(2)

    @pl.when(k == 0)
    def _():
        # Bias folded into the init (replaces zero-fill; no epilogue add).
        o_ref[...] = jnp.broadcast_to(b_ref[...], o_ref.shape)

    o_ref[...] += jnp.dot(x_ref[...], w_ref[...],
                          preferred_element_type=jnp.float32)


def _conv1d_kernel_acc(x_ref, w_ref, b_ref, o_ref, acc_ref):
    """Non-f32 output, multi-step k: f32 scratch accumulator, cast at the end."""
    k = pl.program_id(2)

    @pl.when(k == 0)
    def _():
        acc_ref[...] = jnp.broadcast_to(b_ref[...], acc_ref.shape)

    acc_ref[...] += jnp.dot(x_ref[...], w_ref[...],
                            preferred_element_type=jnp.float32)

    @pl.when(k == pl.num_programs(2) - 1)
    def _():
        o_ref[...] = acc_ref[...].astype(o_ref.dtype)


# ---------------------------------------------------------------------------
# Helpers
# ---------------------------------------------------------------------------
def _round_up(v, m):
    return ((v + m - 1) // m) * m


def _cdiv(a, b):
    return (a + b - 1) // b


def _vmem_capacity_bytes():
    try:
        return int(pltpu.get_tpu_info().vmem_capacity_bytes)
    except Exception:
        return 64 << 20  # conservative fallback (v7x physical VMEM)


def prepare_conv1d_weight(weight, compute_dtype=jnp.bfloat16):
    """Cast the (nx, nf) weight once at parameter-load time so the per-call
    cast (a full weight HBM read+write) inside conv1d_pallas is a no-op."""
    return weight if compute_dtype is None else weight.astype(compute_dtype)


def _pick_tiles(M, nx, nf, bx, bw, bo, use_scratch, tile_budget, sub_m):
    """MXU-aligned tile selection driven by the VMEM budget."""
    big_vmem = tile_budget >= (48 << 20)          # v5e / v6e (128 MiB physical)
    tm_cap = 1024 if big_vmem else 512
    tn_cap = 512

    Np128 = _round_up(max(nf, 1), 128)
    Kp128 = _round_up(max(nx, 1), 128)

    tm = min(tm_cap, _round_up(max(M, 1), sub_m))

    # tn: largest 128-multiple <= tn_cap that divides round_up(nf, 128), so N
    # never needs padding for the usual 128-aligned transformer widths.
    tn = 128
    for t in range(min(tn_cap, Np128), 127, -128):
        if Np128 % t == 0:
            tn = t
            break

    # tk: prefer the whole reduction in one step (strips must fit the budget
    # double-buffered); otherwise the largest 128-multiple that fits, with a
    # bounded search for a divisor of Kp128 to avoid K padding.
    const = 2 * tn * 4 + 2 * tm * tn * bo + (tm * tn * 4 if use_scratch else 0)
    per_k = 2 * tm * bx + 2 * tn * bw
    tk_cap = max(128, ((tile_budget - const) // per_k) // 128 * 128)
    if Kp128 <= tk_cap:
        tk = Kp128
    else:
        tk = tk_cap
        for t in range(tk_cap, max(128, tk_cap - 128 * 32) - 1, -128):
            if Kp128 % t == 0:
                tk = t
                break

    # v7x megacore: a (1, 1, k) grid serializes on one TensorCore.  Keep at
    # least one "parallel" axis >= 2 when the problem allows (negligible cost
    # on single-TC v5e/v6e: one extra ~0.35 us grid step).
    gi, gj = _cdiv(max(M, 1), tm), Np128 // tn
    if gi == 1 and gj == 1:
        if Np128 >= 256:
            for t in range(Np128 // 2 // 128 * 128, 127, -128):
                if Np128 % t == 0:
                    tn = t
                    break
        elif M > sub_m:
            tm = _round_up(_cdiv(M, 2), sub_m)

    return tm, tn, tk


# ---------------------------------------------------------------------------
# Public wrapper
# ---------------------------------------------------------------------------
def conv1d_pallas(x, weight, bias, *, tm=None, tn=None, tk=None,
                  compute_dtype=jnp.bfloat16):
    """y = x @ weight + bias.  weight: (nx, nf), bias: (nf,), x: (..., nx).

    compute_dtype: MXU operand dtype (default bf16; expect ~1e-2 relative
    error on products vs f32 -- accumulation stays f32).  Pass None to keep
    the input dtypes.  Pre-cast the weight with `prepare_conv1d_weight` to
    avoid a per-call weight cast pass.
    """
    nx, nf = weight.shape
    orig_shape = x.shape
    out_dtype = x.dtype

    x2d = x.reshape(-1, nx)
    M = x2d.shape[0]

    # Degenerate shapes.
    if M == 0 or nf == 0:
        return jnp.zeros(orig_shape[:-1] + (nf,), dtype=out_dtype)
    if nx == 0:
        y2d = jnp.broadcast_to(bias.astype(out_dtype), (M, nf))
        return y2d.reshape(orig_shape[:-1] + (nf,))

    if compute_dtype is not None:
        if x2d.dtype != compute_dtype:
            x2d = x2d.astype(compute_dtype)
        if weight.dtype != compute_dtype:
            # Prefer hoisting this with prepare_conv1d_weight at load time.
            weight = weight.astype(compute_dtype)

    bx = jnp.dtype(x2d.dtype).itemsize
    bw = jnp.dtype(weight.dtype).itemsize
    bo = jnp.dtype(out_dtype).itemsize
    use_scratch = out_dtype != jnp.float32

    # Sub-32-bit dtypes pack along sublanes: bf16 -> 16 rows/vreg, 8-bit -> 32.
    sub_m = {1: 32, 2: 16, 4: 8}.get(bx, 8)

    # Generation-aware VMEM budget: ~75% of physical (leave Mosaic headroom),
    # tiles sized to ~85% of that.
    vmem_cap = _vmem_capacity_bytes()
    vmem_ceiling = int(0.75 * vmem_cap)
    tile_budget = int(0.85 * vmem_ceiling)

    atm, atn, atk = _pick_tiles(M, nx, nf, bx, bw, bo, use_scratch,
                                tile_budget, sub_m)
    tm = _round_up(tm or atm, sub_m)
    tn = _round_up(tn or atn, 128)
    tk = _round_up(tk or atk, 128)
    tm = min(tm, _round_up(M, sub_m))

    # Only the reduction (K) axis ever needs real zero-padding: garbage in a
    # padded K block would corrupt live outputs.  M raggedness is left to
    # Pallas edge blocks (OOB reads only feed output rows that are never
    # written back), so no extra HBM pass over the activations.
    Kp = _round_up(nx, tk)
    Np = _round_up(nf, tn)
    if Kp != nx or Np != nf:
        weight = jnp.pad(weight, ((0, Kp - nx), (0, Np - nf)))
    if Kp != nx:
        x2d = jnp.pad(x2d, ((0, 0), (0, Kp - nx)))

    b2d = bias.astype(jnp.float32).reshape(1, nf)
    if Np != nf:
        b2d = jnp.pad(b2d, ((0, 0), (0, Np - nf)))

    gi, gj, nk = _cdiv(M, tm), Np // tn, Kp // tk

    if nk == 1:
        kernel, scratch_shapes = _conv1d_kernel_single_step, []
    elif out_dtype == jnp.float32:
        kernel, scratch_shapes = _conv1d_kernel_f32_out, []
    else:
        kernel = _conv1d_kernel_acc
        scratch_shapes = [pltpu.VMEM((tm, tn), jnp.float32)]

    vmem_est = (2 * tm * tk * bx + 2 * tk * tn * bw + 2 * tn * 4
                + 2 * tm * tn * bo + (tm * tn * 4 if scratch_shapes else 0))
    vmem_limit = min(vmem_ceiling, max(32 << 20, 2 * vmem_est))
    vmem_limit = max(vmem_limit, vmem_est + (4 << 20))
    vmem_limit = int(min(vmem_limit, int(0.95 * vmem_cap)))

    out2d = pl.pallas_call(
        kernel,
        out_shape=jax.ShapeDtypeStruct((M, Np), out_dtype),
        grid_spec=pltpu.PrefetchScalarGridSpec(
            num_scalar_prefetch=0,
            grid=(gi, gj, nk),
            in_specs=[
                pl.BlockSpec((tm, tk), lambda i, j, k: (i, k)),   # x tile
                pl.BlockSpec((tk, tn), lambda i, j, k: (k, j)),   # weight tile
                pl.BlockSpec((1, tn), lambda i, j, k: (0, j)),    # bias tile
            ],
            out_specs=pl.BlockSpec((tm, tn), lambda i, j, k: (i, j)),
            scratch_shapes=scratch_shapes,
        ),
        compiler_params=pltpu.CompilerParams(
            dimension_semantics=("parallel", "parallel", "arbitrary"),
            vmem_limit_bytes=vmem_limit,
        ),
    )(x2d, weight, b2d)

    if Np != nf:
        out2d = out2d[:, :nf]
    return out2d.reshape(orig_shape[:-1] + (nf,))


# ---------------------------------------------------------------------------
# Demo / self-check
# ---------------------------------------------------------------------------
if __name__ == "__main__":
    # Module config: nx = input features, nf = output features.
    batch, seq, nx, nf = 2, 8, 32, 64

    key = jax.random.PRNGKey(0)
    k_w, k_x = jax.random.split(key)

    # Deterministic parameter init, matching nn.init.normal_(std=0.02) / zeros.
    weight = 0.02 * jax.random.normal(k_w, (nx, nf), dtype=jnp.float32)
    bias = jnp.zeros((nf,), dtype=jnp.float32)

    x = jax.random.normal(k_x, (batch, seq, nx), dtype=jnp.float32)

    # Reference in plain JAX (same math as torch.addmm).
    y_ref = (x.reshape(-1, nx) @ weight + bias).reshape(batch, seq, nf)

    # Default path: bf16 MXU operands (weight pre-cast once), f32 accumulation.
    w_bf16 = prepare_conv1d_weight(weight)           # hoisted weight cast
    y = conv1d_pallas(x, w_bf16, bias)
    y = jax.block_until_ready(y)
    assert y.shape == (batch, seq, nf)
    assert jnp.allclose(y, y_ref, atol=3e-2, rtol=3e-2)

    # Exact path: keep f32 operands on the MXU.
    y32 = conv1d_pallas(x, weight, bias, compute_dtype=None)
    y32 = jax.block_until_ready(y32)
    assert jnp.allclose(y32, y_ref, atol=1e-5, rtol=1e-5)

    print("KERNEL_OK")
</pallas_src>

<mosaic_0001>
module attributes {stable_mosaic.version = 11 : i64} {
  func.func @_conv1d_kernel_single_step(%arg0: i32, %arg1: i32, %arg2: i32, %arg3: memref<16x128xbf16, #tpu.memory_space<vmem>>, %arg4: memref<128x128xbf16, #tpu.memory_space<vmem>>, %arg5: memref<1x128xf32, #tpu.memory_space<vmem>>, %arg6: memref<16x128xf32, #tpu.memory_space<vmem>>) attributes {dimension_semantics = [#tpu.dimension_semantics<parallel>, #tpu.dimension_semantics<parallel>, #tpu.dimension_semantics<arbitrary>], iteration_bounds = array<i64: 1, 1, 1>, scalar_prefetch = 0 : i64, scratch_operands = 0 : i64, tpu.core_type = #tpu.core_type<tc>, window_params = [{transform_indices = @transform_0, window_bounds = array<i64: 16, 128>}, {transform_indices = @transform_1, window_bounds = array<i64: 128, 128>}, {transform_indices = @transform_2, window_bounds = array<i64: 1, 128>}, {transform_indices = @transform_3, window_bounds = array<i64: 16, 128>}]} {
    %c0 = arith.constant 0 : index
    %c0_0 = arith.constant 0 : index
    %0 = vector.load %arg3[%c0, %c0_0] : memref<16x128xbf16, #tpu.memory_space<vmem>>, vector<16x128xbf16>
    %c0_1 = arith.constant 0 : index
    %c0_2 = arith.constant 0 : index
    %1 = vector.load %arg4[%c0_1, %c0_2] : memref<128x128xbf16, #tpu.memory_space<vmem>>, vector<128x128xbf16>
    %cst = arith.constant dense<0.000000e+00> : vector<16x128xf32>
    %2 = tpu.matmul %0, %1, %cst {dimension_numbers = #tpu.dot_dimension_numbers<[1], [0], [0], [1], [0, 0, 1, 1], [], []>} : vector<16x128xbf16>, vector<128x128xbf16>, vector<16x128xf32> -> vector<16x128xf32>
    %c0_3 = arith.constant 0 : index
    %c0_4 = arith.constant 0 : index
    %3 = vector.load %arg5[%c0_3, %c0_4] : memref<1x128xf32, #tpu.memory_space<vmem>>, vector<1x128xf32>
    %4 = vector.broadcast %3 : vector<1x128xf32> to vector<16x128xf32>
    %5 = arith.addf %2, %4 : vector<16x128xf32>
    %c0_5 = arith.constant 0 : index
    %c0_6 = arith.constant 0 : index
    %6 = vector.load %arg6[%c0_5, %c0_6] : memref<16x128xf32, #tpu.memory_space<vmem>>, vector<16x128xf32>
    tpu.vector_store %arg6[%c0_5, %c0_6], %5 {strides = array<i32>} : memref<16x128xf32, #tpu.memory_space<vmem>>, vector<16x128xf32>,
    return
  }
  func.func @transform_0(%arg0: i32, %arg1: i32, %arg2: i32) -> (i32, i32) {
    %c0_i32 = arith.constant 0 : i32
    return %arg0, %arg2 : i32, i32
  }
  func.func @transform_1(%arg0: i32, %arg1: i32, %arg2: i32) -> (i32, i32) {
    %c0_i32 = arith.constant 0 : i32
    return %arg2, %arg1 : i32, i32
  }
  func.func @transform_2(%arg0: i32, %arg1: i32, %arg2: i32) -> (i32, i32) {
    %c0_i32 = arith.constant 0 : i32
    %c0_i32_0 = arith.constant 0 : i32
    return %c0_i32, %arg1 : i32, i32
  }
  func.func @transform_3(%arg0: i32, %arg1: i32, %arg2: i32) -> (i32, i32) {
    %c0_i32 = arith.constant 0 : i32
    return %arg0, %arg1 : i32, i32
  }
}

</mosaic_0001>

<bundles_post_ra>
// kernel: tpu_custom_call.1
= control target key start
LH: loop header
LB: loop body
LE: loop exit
PB: predicated region body
PF: predicated region fallthrough
CT: control target
= control target key end

     0   :  { %8 = vsyncpa [#allocation3], 0  ;;  %s381_s0 = inlined_call_operand.hbm [shape: bf16[16,128], index: 0, kind: input, shape index: {}]   ;;  %s382_s1 = inlined_call_operand.hbm [shape: bf16[128,128], index: 1, kind: input, shape index: {}]   ;;  %s383_s2 = inlined_call_operand.vmem [shape: f32[1,128], index: 2, kind: input, shape index: {}]   ;;  %s384_s3 = inlined_call_operand.hbm [shape: f32[16,128], index: 3, kind: output, shape index: {}]  }
   0x1   :  { %9 = vsyncpa [#allocation6], 0 }
   0x2   :  { %10 = vsyncpa [#allocation4], 0  ;;  %s313_s12 = smov [#allocation2]   ;;  %s241_s16 = scalar_lea.hbm %s381_s0, 128 }
   0x3   :  { %s16_s13 = sshll.u32 %s313_s12, 4  ;;  %p242_p0 = scmp.ne.s32.totalorder %s381_s0, %s241_s16  ;;  %s17_s13 = int_to_ptr.vmem [resolvable:$true] %s16_s13 }
   0x4   :  { %p245_p1 = scmp.lt.u32.totalorder %s241_s16, %s381_s0 }
   0x6   :  { %p247_p2 = pnand %p245_p1, %p242_p0 }
   0x8   :  { %250 = shalt.err (!%p247_p2)
}
   0x9   :  { %s251_s21 = scalar_lea.vmem %s17_s13, 128  ;;  %p256_p4 = scmp.lt.s32.totalorder %s17_s13, %s17_s13 }
   0xa   :  { %p252_p3 = scmp.ne.s32.totalorder %s17_s13, %s251_s21  ;;  %p257_p5 = scmp.lt.s32.totalorder %s251_s21, %s251_s21 }
   0xc   :  { %p258_p6 = por %p257_p5, %p256_p4 }
   0xe   :  { %p259_p7 = pnand %p258_p6, %p252_p3 }
  0x10   :  { %262 = shalt.err (!%p259_p7)
}
  0x11   :  { %s314_s22 = smov 64   ;;  %s315_s23 = smov 4  }
  0x12   :  { %22 = dma.hbm_to_vmem [thread:$0]  %s381_s0, 128, %s17_s13, [#allocation3], %s314_s22, %s314_s22, %s315_s23  }
  0x13   :  { %s316_s26 = smov [#allocation5]   ;;  %s263_s30 = scalar_lea.hbm %s382_s1, 1024 }
  0x14   :  { %s28_s27 = sshll.u32 %s316_s26, 4  ;;  %p264_p8 = scmp.ne.s32.totalorder %s382_s1, %s263_s30  ;;  %s29_s27 = int_to_ptr.vmem [resolvable:$true] %s28_s27 }
  0x15   :  { %p267_p9 = scmp.lt.u32.totalorder %s263_s30, %s382_s1 }
  0x17   :  { %p269_p10 = pnand %p267_p9, %p264_p8 }
  0x19   :  { %272 = shalt.err (!%p269_p10)
}
  0x1a   :  { %s273_s8 = scalar_lea.vmem %s29_s27, 1024  ;;  %p278_p12 = scmp.lt.s32.totalorder %s29_s27, %s29_s27 }
  0x1b   :  { %p274_p11 = scmp.ne.s32.totalorder %s29_s27, %s273_s8  ;;  %p279_p13 = scmp.lt.s32.totalorder %s273_s8, %s273_s8 }
  0x1d   :  { %p280_p0 = por %p279_p13, %p278_p12 }
  0x1f   :  { %p281_p1 = pnand %p280_p0, %p274_p11 }
  0x21   :  { %284 = shalt.err (!%p281_p1)
}
  0x22   :  { %34 = dma.hbm_to_vmem [thread:$0]  %s382_s1, 1024, %s29_s27, [#allocation6], %s314_s22, %s314_s22, %s315_s23  }
  0x23   :  { %307 = dma.done.wait [#allocation3], 128  }
  0x24   :  { %308 = vsyncadd [#allocation3], 4294967168 }
  0x25   :  { %309 = dma.done.wait [#allocation6], 1024  }
  0x26   :  { %310 = vsyncadd [#allocation6], 4294966272  ;;  %v317_v0 = vmov 0.0   ;;  %vm318_vm0 = vmmov 0   ;;  %v232_v1 = vld [vmem:[#allocation5] sm:$0xff]   ;;  %v233_v2 = vld [vmem:[#allocation5 + $0x8] sm:$0xff]  }
  0x27   :  { %203 = vmatprep.subr.bf16.mxu0 %v317_v0  ;;  %219 = vmatprep.mubr.msk.bf16.mxu0 %vm318_vm0, %v317_v0  ;;  %v234_v3 = vld [vmem:[#allocation5 + $0x10] sm:$0xff]   ;;  %v235_v4 = vld [vmem:[#allocation5 + $0x18] sm:$0xff]   ;;  %v236_v5 = vld [vmem:[#allocation5 + $0x20] sm:$0xff]   ;;  %s319_s11 = smov [#allocation7]  }
  0x28   :  { %204 = vmatpush3.bf16.msra.mxu0 %v232_v1  ;;  %v237_v6 = vld [vmem:[#allocation5 + $0x28] sm:$0xff]   ;;  %v238_v7 = vld [vmem:[#allocation5 + $0x30] sm:$0xff]   ;;  %v239_v8 = vld [vmem:[#allocation5 + $0x38] sm:$0xff]   ;;  %s171_s12 = sshll.u32 %s319_s11, 4  ;;  %s172_s12 = int_to_ptr.vmem [resolvable:$true] %s171_s12 }
  0x29   :  { %205 = vmatprep.subr.bf16.mxu0 %v317_v0  ;;  %v240_v9 = vld [vmem:[#allocation2] sm:$0xff]   ;;  %s285_s13 = scalar_lea.vmem %s172_s12, 256  ;;  %p290_p3 = scmp.lt.s32.totalorder %s172_s12, %s172_s12 }
  0x2a   :  { %v184_v10 = vld [vmem:[%s383_s2] ss:$0 sm:$0xff]  ;;  %p286_p2 = scmp.ne.s32.totalorder %s172_s12, %s285_s13  ;;  %p291_p4 = scmp.lt.s32.totalorder %s285_s13, %s285_s13 }
  0x2c   :  { %206 = vmatpush3.bf16.msra.mxu0 %v233_v2  ;;  %p292_p5 = por %p291_p4, %p290_p3 }
  0x2d   :  { %207 = vmatprep.subr.bf16.mxu0 %v317_v0 }
  0x2e   :  { %p293_p6 = pnand %p292_p5, %p286_p2 }
  0x30   :  { %208 = vmatpush3.bf16.msra.mxu0 %v234_v3 }
  0x31   :  { %209 = vmatprep.subr.bf16.mxu0 %v317_v0 }
  0x34   :  { %210 = vmatpush3.bf16.msra.mxu0 %v235_v4 }
  0x35   :  { %211 = vmatprep.subr.bf16.mxu0 %v317_v0 }
  0x38   :  { %212 = vmatpush3.bf16.msra.mxu0 %v236_v5 }
  0x39   :  { %213 = vmatprep.subr.bf16.mxu0 %v317_v0 }
  0x3c   :  { %214 = vmatpush3.bf16.msra.mxu0 %v237_v6 }
  0x3d   :  { %215 = vmatprep.subr.bf16.mxu0 %v317_v0 }
  0x40   :  { %216 = vmatpush3.bf16.msra.mxu0 %v238_v7 }
  0x41   :  { %217 = vmatprep.subr.bf16.mxu0 %v317_v0 }
  0x44   :  { %218 = vmatpush3.bf16.msra.mxu0 %v239_v8 }
  0x47   :  { %220 = vmatmul.mubr.bf16.vlgmr.msra.gmra.mrb[0].mxu0 %v240_v9 }
 0x11a   :  { %v157_v11 = vpop.f32.mrb[0].mxu0 }
 0x11b   :  { %v158_v12 = vadd.f32 %v184_v10, %v157_v11  ;;  %v221_v13 = vpop.f32.mrb[1].mxu0 }
 0x11c   :  { %v160_v14 = vpop.f32.mrb[2].mxu0 }
 0x11d   :  { %164 = vst [vmem:[#allocation7] sm:$0xff] %v158_v12  ;;  %v161_v15 = vadd.f32 %v184_v10, %v160_v14  ;;  %v222_v16 = vpop.f32.mrb[3].mxu0 }
 0x11f   :  { %165 = vst [vmem:[#allocation7 + $0x8] sm:$0xff] %v161_v15 }
 0x120   :  { %296 = shalt.err (!%p293_p6)
}
 0x121   :  { %s297_s15 = scalar_lea.hbm %s384_s3, 256 }
 0x122   :  { %p298_p7 = scmp.ne.s32.totalorder %s384_s3, %s297_s15  ;;  %p301_p8 = scmp.lt.u32.totalorder %s297_s15, %s384_s3 }
 0x124   :  { %p303_p9 = pnand %p301_p8, %p298_p7 }
 0x126   :  { %306 = shalt.err (!%p303_p9)
}
 0x127   :  { %s320_s20 = smov 128   ;;  %s321_s21 = smov 8  }
 0x128   :  { %177 = dma.vmem_to_hbm [thread:$0]  %s172_s12, 256, %s384_s3, [#allocation4], %s320_s20, %s320_s20, %s321_s21  }
 0x129   :  { %311 = dma.done.wait [#allocation4], 256  }
 0x12a   :  { %312 = vsyncadd [#allocation4], 4294967040 }
 0x12b   :  { %181 = vsyncpa [#allocation3], 1 }
 0x12c   :  { %182 = vsyncpa [#allocation6], 1 }
 0x12d   :  { %183 = vsyncpa [#allocation4], 1 }

</bundles_post_ra>
